<compile_context>
chip_gen: v6e
topology: v6e:2x2x1
jax: 0.10.0
libtpu: 0.0.40
codegen_flags: <defaults>
</compile_context>

<pallas_src>
import functools

import jax
import jax.numpy as jnp
from jax import lax
from jax.experimental import pallas as pl
from jax.experimental.pallas import tpu as pltpu


def _round_up(x, m):
    return ((x + m - 1) // m) * m


def _vmem_capacity_bytes():
    try:
        cap = int(pltpu.get_tpu_info().vmem_capacity_bytes)
        if cap > 0:
            return cap
    except Exception:
        pass
    return 64 << 20          # conservative fallback (v7x per-core VMEM)


def _choose_tile(n_rows, dp, budget):
    """Row/col tile of the (padded) 2B x 2B kernel matrix."""
    def est(t):
        # bf16 row+col tiles (double-buffered) + ~12 live (t,t) f32 temps.
        return 8 * t * dp + 48 * t * t

    if n_rows <= 512:
        t = _round_up(max(n_rows, 8), 8)
        if est(t) <= budget:
            return t
    fits = [t for t in (512, 256, 128) if est(t) <= budget] or [128]
    min_pad = min(_round_up(n_rows, t) for t in fits)
    # Allow ~12.5% extra padding in exchange for a bigger tile (fills the
    # 256-wide MXU on v6e/v7x, fewer grid steps everywhere).
    ok = [t for t in fits if _round_up(n_rows, t) * 8 <= min_pad * 9]
    return max(ok)


def _mmd_tile_kernel(i_tbl_ref, j_tbl_ref,            # scalar-prefetch (SMEM)
                     neginv_ref,                       # (knum,) f32 in SMEM
                     x_ref, y_ref, sqr_ref, sqc_ref,   # VMEM tiles
                     out_ref, *,
                     batch, n_valid, tile, mult, knum):
    s = pl.program_id(0)
    i_blk = i_tbl_ref[s]
    j_blk = j_tbl_ref[s]

    x = x_ref[...]                                   # (T, Dp) bf16 row tile
    y = y_ref[...]                                   # (T, Dp) bf16 col tile

    # Pairwise squared distances: ||x||^2 + ||y||^2 - 2 x.y (norms arrive as
    # exact f32 vectors -> plain VPU broadcast adds; gram on the MXU).
    gram = lax.dot_general(x, y, (((1,), (1,)), ((), ())),
                           preferred_element_type=jnp.float32)  # (T, T)
    l2 = sqr_ref[...] + sqc_ref[...] - 2.0 * gram

    row_ids = i_blk * tile + lax.broadcasted_iota(jnp.int32, (tile, 1), 0)
    col_ids = j_blk * tile + lax.broadcasted_iota(jnp.int32, (1, tile), 1)
    # Clamp fp-cancellation negatives; force the exact-zero diagonal (only
    # the i==j tiles actually contain diagonal elements; harmless elsewhere).
    l2 = jnp.maximum(l2, 0.0)
    l2 = jnp.where(row_ids == col_ids, 0.0, l2)

    # Validity (padded rows masked out) and block signs (+1 src / -1 tgt).
    vrow = (row_ids < n_valid).astype(jnp.float32)            # (T, 1)
    vcol = (col_ids < n_valid).astype(jnp.float32)            # (1, T)
    srow = jnp.where(row_ids < batch, 1.0, -1.0) * vrow
    scol = jnp.where(col_ids < batch, 1.0, -1.0) * vcol

    if mult == 2.0:
        # One EUP exp per element (widest bandwidth); the narrower bandwidths
        # follow by repeated VPU squaring: exp(-d/(b))^2 = exp(-d/(b/2)).
        e = jnp.exp(l2 * neginv_ref[knum - 1])
        kacc = e
        for _ in range(knum - 1):
            e = e * e
            kacc = kacc + e
    else:
        # General multiplier: reciprocals precomputed in the wrapper (SMEM),
        # so the loop is exp-only.
        kacc = jnp.exp(l2 * neginv_ref[0])
        for bi in range(1, knum):
            kacc = kacc + jnp.exp(l2 * neginv_ref[bi])

    # Two-stage signed reduction: one (T,T) multiply + one sublane reduce to a
    # lane-wide (1, T) partial. Off-diagonal tile pairs are doubled (symmetry).
    weight = 1.0 + (j_blk > i_blk).astype(jnp.float32)
    colsum = jnp.sum(kacc * srow, axis=0, keepdims=True)       # (1, T)
    out_ref[...] = colsum * scol * weight


def mmd_loss(source, target, kernel_multiplier=2.0, kernel_number=5,
             fix_sigma=None, tile_size=None):
    assert source.ndim == 2 and source.shape == target.shape
    batch, d = source.shape
    n = 2 * batch
    mult = float(kernel_multiplier)
    knum = int(kernel_number)
    assert knum >= 1

    # ---- wrapper-side prep (O(N*D), XLA) ---------------------------------
    total = jnp.concatenate([source, target], axis=0).astype(jnp.float32)
    # Mean-centering is free, distance-preserving, and shrinks the norms
    # (less cancellation in ||x||^2 + ||y||^2 - 2 x.y with bf16 gram).
    total = total - jnp.mean(total, axis=0, keepdims=True)
    sq_full = jnp.sum(total * total, axis=1)                   # (n,) exact f32

    # Data-driven bandwidth in closed form -> no bandwidth grid pass:
    #   sum_ij ||t_i - t_j||^2 = 2 * N * sum_i ||t_i - mean||^2
    if fix_sigma:
        bandwidth = jnp.float32(fix_sigma)
    else:
        bandwidth = 2.0 * n * jnp.sum(sq_full) / jnp.float32(n * n - n)
    bw_base = bandwidth / jnp.float32(mult ** (knum // 2))
    neg_inv = (-1.0 / (bw_base * (mult ** jnp.arange(knum, dtype=jnp.float32)))
               ).astype(jnp.float32)                            # (knum,)

    # ---- tiling (generation-aware VMEM budget) ----------------------------
    dp = _round_up(max(d, 128), 128)        # lane-dense feature width
    # TODO(synk): feature-dim (K) tiling for very large D; each row/col tile
    # currently carries the full padded feature width.
    vmem_cap = _vmem_capacity_bytes()
    vmem_limit = max(min(3 * vmem_cap // 4, vmem_cap - (8 << 20)), 24 << 20)
    budget = max(vmem_limit - (6 << 20), 16 << 20)
    if tile_size is not None:
        tile = int(tile_size)               # must be %128==0 or cover n_pad
        assert tile % 8 == 0
    else:
        tile = _choose_tile(n, dp, budget)
    n_pad = _round_up(n, tile)
    n_tiles = n_pad // tile

    # Triangular enumeration of tile pairs (j >= i); the lower triangle is
    # recovered by symmetry (off-diagonal tiles doubled inside the kernel).
    pairs = [(a, b) for a in range(n_tiles) for b in range(a, n_tiles)]
    n_steps = len(pairs)
    i_tbl = jnp.asarray([p[0] for p in pairs], dtype=jnp.int32)
    j_tbl = jnp.asarray([p[1] for p in pairs], dtype=jnp.int32)

    total = jnp.pad(total, ((0, n_pad - n), (0, dp - d)))
    sq = jnp.pad(sq_full, (0, n_pad - n))
    sq_row = sq.reshape(n_pad, 1)
    sq_col = sq.reshape(1, n_pad)
    total_bf16 = total.astype(jnp.bfloat16)    # halves HBM traffic / VMEM

    kernel = functools.partial(
        _mmd_tile_kernel, batch=batch, n_valid=n, tile=tile,
        mult=mult, knum=knum)

    # NOTE: if profiling shows exposed DMA (small tile, huge dp), adding
    # pipeline_mode=pl.Buffered(3) on the col-tile / sq_col specs is cheap.
    partials = pl.pallas_call(
        kernel,
        out_shape=jax.ShapeDtypeStruct((n_steps, tile), jnp.float32),
        grid_spec=pltpu.PrefetchScalarGridSpec(
            num_scalar_prefetch=2,                 # i_tbl, j_tbl (SMEM)
            grid=(n_steps,),
            in_specs=[
                pl.BlockSpec(memory_space=pltpu.MemorySpace.SMEM),   # neg_inv
                pl.BlockSpec((tile, dp), lambda s, it, jt: (it[s], 0)),  # rows
                pl.BlockSpec((tile, dp), lambda s, it, jt: (jt[s], 0)),  # cols
                pl.BlockSpec((tile, 1), lambda s, it, jt: (it[s], 0)),   # ||r||^2
                pl.BlockSpec((1, tile), lambda s, it, jt: (0, jt[s])),   # ||c||^2
            ],
            out_specs=pl.BlockSpec((1, tile), lambda s, it, jt: (s, 0)),
        ),
        compiler_params=pltpu.CompilerParams(
            # Steps are fully independent (distinct output blocks, no scratch)
            # -> "parallel" lets v7x shard the axis across its 2 TensorCores.
            dimension_semantics=("parallel",),
            vmem_limit_bytes=int(vmem_limit),
        ),
    )(i_tbl, j_tbl, neg_inv, total_bf16, total_bf16, sq_row, sq_col)

    return jnp.sum(partials) / jnp.float32(batch * batch)


def _mmd_loss_ref(source, target, kernel_multiplier=2.0, kernel_number=5,
                  fix_sigma=None):
    """Pure-JAX reference mirroring the PyTorch module exactly."""
    b = source.shape[0]
    total = jnp.concatenate([source, target], axis=0).astype(jnp.float32)
    n = total.shape[0]
    diff = total[:, None, :] - total[None, :, :]
    l2 = jnp.sum(diff * diff, axis=-1)
    if fix_sigma:
        bw = jnp.float32(fix_sigma)
    else:
        bw = jnp.sum(l2) / (n * n - n)
    bw = bw / (kernel_multiplier ** (kernel_number // 2))
    kernels = sum(jnp.exp(-l2 / (bw * kernel_multiplier ** i))
                  for i in range(kernel_number))
    return jnp.mean(kernels[:b, :b] + kernels[b:, b:]
                    - kernels[:b, b:] - kernels[b:, :b])


if __name__ == "__main__":
    key = jax.random.PRNGKey(0)
    k1, k2, k3, k4, k5, k6 = jax.random.split(key, 6)

    # Default path (data-driven bandwidth), small shapes.
    B, D = 8, 32
    src = jax.random.normal(k1, (B, D), dtype=jnp.float32)
    tgt = jax.random.normal(k2, (B, D), dtype=jnp.float32) + 0.5
    loss = jax.block_until_ready(mmd_loss(src, tgt))
    ref = jax.block_until_ready(_mmd_loss_ref(src, tgt))
    assert jnp.isfinite(loss), "loss is not finite"
    assert jnp.allclose(loss, ref, rtol=5e-3, atol=1e-3), (loss, ref)

    # fix_sigma path (static bandwidth).
    loss_fs = jax.block_until_ready(mmd_loss(src, tgt, fix_sigma=50.0))
    ref_fs = jax.block_until_ready(_mmd_loss_ref(src, tgt, fix_sigma=50.0))
    assert jnp.allclose(loss_fs, ref_fs, rtol=5e-3, atol=1e-3), (loss_fs, ref_fs)

    # Odd batch / feature sizes (row + lane padding and masking).
    B2, D2 = 5, 20
    src2 = jax.random.normal(k3, (B2, D2), dtype=jnp.float32)
    tgt2 = jax.random.normal(k4, (B2, D2), dtype=jnp.float32) + 1.0
    loss2 = jax.block_until_ready(mmd_loss(src2, tgt2))
    ref2 = jax.block_until_ready(_mmd_loss_ref(src2, tgt2))
    assert jnp.allclose(loss2, ref2, rtol=5e-3, atol=1e-3), (loss2, ref2)

    # Multi-tile triangular grid path (forced tile=128, n=160 -> 3 tile pairs,
    # exercises the scalar-prefetch index tables + off-diagonal doubling).
    B3, D3 = 80, 16
    src3 = jax.random.normal(k5, (B3, D3), dtype=jnp.float32)
    tgt3 = jax.random.normal(k6, (B3, D3), dtype=jnp.float32) + 0.25
    loss3 = jax.block_until_ready(mmd_loss(src3, tgt3, tile_size=128))
    ref3 = jax.block_until_ready(_mmd_loss_ref(src3, tgt3))
    assert jnp.allclose(loss3, ref3, rtol=1e-2, atol=2e-3), (loss3, ref3)

    print("KERNEL_OK")
</pallas_src>

<mosaic_0001>
module attributes {stable_mosaic.version = 11 : i64} {
  func.func @_mmd_tile_kernel(%arg0: i32, %arg1: memref<1xi32, #tpu.memory_space<smem>>, %arg2: memref<1xi32, #tpu.memory_space<smem>>, %arg3: memref<5xf32, #tpu.memory_space<smem>>, %arg4: memref<16x128xbf16, #tpu.memory_space<vmem>>, %arg5: memref<16x128xbf16, #tpu.memory_space<vmem>>, %arg6: memref<16x1xf32, #tpu.memory_space<vmem>>, %arg7: memref<1x16xf32, #tpu.memory_space<vmem>>, %arg8: memref<1x16xf32, #tpu.memory_space<vmem>>) attributes {dimension_semantics = [#tpu.dimension_semantics<parallel>], iteration_bounds = array<i64: 1>, scalar_prefetch = 2 : i64, scratch_operands = 0 : i64, tpu.core_type = #tpu.core_type<tc>, window_params = [{transform_indices = @transform_0, window_bounds = array<i64: 5>}, {transform_indices = @transform_1, window_bounds = array<i64: 16, 128>}, {transform_indices = @transform_2, window_bounds = array<i64: 16, 128>}, {transform_indices = @transform_3, window_bounds = array<i64: 16, 1>}, {transform_indices = @transform_4, window_bounds = array<i64: 1, 16>}, {transform_indices = @transform_5, window_bounds = array<i64: 1, 16>}]} {
    %0 = arith.index_cast %arg0 : i32 to index
    %1 = memref.load %arg1[%0] : memref<1xi32, #tpu.memory_space<smem>>
    %2 = arith.index_cast %arg0 : i32 to index
    %3 = memref.load %arg2[%2] : memref<1xi32, #tpu.memory_space<smem>>
    %c0 = arith.constant 0 : index
    %c0_0 = arith.constant 0 : index
    %4 = vector.load %arg4[%c0, %c0_0] : memref<16x128xbf16, #tpu.memory_space<vmem>>, vector<16x128xbf16>
    %c0_1 = arith.constant 0 : index
    %c0_2 = arith.constant 0 : index
    %5 = vector.load %arg5[%c0_1, %c0_2] : memref<16x128xbf16, #tpu.memory_space<vmem>>, vector<16x128xbf16>
    %cst = arith.constant dense<0.000000e+00> : vector<16x16xf32>
    %6 = tpu.matmul %4, %5, %cst {dimension_numbers = #tpu.dot_dimension_numbers<[1], [1], [0], [0], [0, 0, 1, 0], [], []>} : vector<16x128xbf16>, vector<16x128xbf16>, vector<16x16xf32> -> vector<16x16xf32>
    %c0_3 = arith.constant 0 : index
    %c0_4 = arith.constant 0 : index
    %7 = vector.load %arg6[%c0_3, %c0_4] : memref<16x1xf32, #tpu.memory_space<vmem>>, vector<16x1xf32>
    %c0_5 = arith.constant 0 : index
    %c0_6 = arith.constant 0 : index
    %8 = vector.load %arg7[%c0_5, %c0_6] : memref<1x16xf32, #tpu.memory_space<vmem>>, vector<1x16xf32>
    %9 = vector.broadcast %7 : vector<16x1xf32> to vector<16x16xf32>
    %10 = vector.broadcast %8 : vector<1x16xf32> to vector<16x16xf32>
    %11 = arith.addf %9, %10 : vector<16x16xf32>
    %cst_7 = arith.constant 2.000000e+00 : f32
    %12 = vector.broadcast %cst_7 : f32 to vector<16x16xf32>
    %13 = arith.mulf %12, %6 : vector<16x16xf32>
    %14 = arith.subf %11, %13 : vector<16x16xf32>
    %c16_i32 = arith.constant 16 : i32
    %15 = arith.muli %1, %c16_i32 : i32
    %16 = tpu.iota {dimensions = array<i32: 0>} : vector<16x1xi32>
    %17 = vector.broadcast %15 : i32 to vector<16x1xi32>
    %18 = arith.addi %17, %16 : vector<16x1xi32>
    %c16_i32_8 = arith.constant 16 : i32
    %19 = arith.muli %3, %c16_i32_8 : i32
    %20 = tpu.iota {dimensions = array<i32: 1>} : vector<1x16xi32>
    %21 = vector.broadcast %19 : i32 to vector<1x16xi32>
    %22 = arith.addi %21, %20 : vector<1x16xi32>
    %cst_9 = arith.constant 0.000000e+00 : f32
    %23 = vector.broadcast %cst_9 : f32 to vector<16x16xf32>
    %24 = arith.maximumf %14, %23 : vector<16x16xf32>
    %25 = vector.broadcast %18 : vector<16x1xi32> to vector<16x16xi32>
    %26 = vector.broadcast %22 : vector<1x16xi32> to vector<16x16xi32>
    %27 = arith.cmpi eq, %25, %26 : vector<16x16xi32>
    %cst_10 = arith.constant 0.000000e+00 : f32
    %28 = vector.broadcast %cst_10 : f32 to vector<16x16xf32>
    %29 = arith.select %27, %28, %24 : vector<16x16xi1>, vector<16x16xf32>
    %c16_i32_11 = arith.constant 16 : i32
    %30 = vector.broadcast %c16_i32_11 : i32 to vector<16x1xi32>
    %31 = arith.cmpi slt, %18, %30 : vector<16x1xi32>
    %32 = arith.extui %31 : vector<16x1xi1> to vector<16x1xi32>
    %33 = arith.sitofp %32 : vector<16x1xi32> to vector<16x1xf32>
    %c16_i32_12 = arith.constant 16 : i32
    %34 = vector.broadcast %c16_i32_12 : i32 to vector<1x16xi32>
    %35 = arith.cmpi slt, %22, %34 : vector<1x16xi32>
    %36 = arith.extui %35 : vector<1x16xi1> to vector<1x16xi32>
    %37 = arith.sitofp %36 : vector<1x16xi32> to vector<1x16xf32>
    %c8_i32 = arith.constant 8 : i32
    %38 = vector.broadcast %c8_i32 : i32 to vector<16x1xi32>
    %39 = arith.cmpi slt, %18, %38 : vector<16x1xi32>
    %cst_13 = arith.constant 1.000000e+00 : f32
    %cst_14 = arith.constant -1.000000e+00 : f32
    %40 = vector.broadcast %cst_13 : f32 to vector<16x1xf32>
    %41 = vector.broadcast %cst_14 : f32 to vector<16x1xf32>
    %42 = arith.select %39, %40, %41 : vector<16x1xi1>, vector<16x1xf32>
    %43 = arith.mulf %42, %33 : vector<16x1xf32>
    %c8_i32_15 = arith.constant 8 : i32
    %44 = vector.broadcast %c8_i32_15 : i32 to vector<1x16xi32>
    %45 = arith.cmpi slt, %22, %44 : vector<1x16xi32>
    %cst_16 = arith.constant 1.000000e+00 : f32
    %cst_17 = arith.constant -1.000000e+00 : f32
    %46 = vector.broadcast %cst_16 : f32 to vector<1x16xf32>
    %47 = vector.broadcast %cst_17 : f32 to vector<1x16xf32>
    %48 = arith.select %45, %46, %47 : vector<1x16xi1>, vector<1x16xf32>
    %49 = arith.mulf %48, %37 : vector<1x16xf32>
    %c4 = arith.constant 4 : index
    %50 = memref.load %arg3[%c4] : memref<5xf32, #tpu.memory_space<smem>>
    %51 = vector.broadcast %50 : f32 to vector<16x16xf32>
    %52 = arith.mulf %29, %51 : vector<16x16xf32>
    %53 = math.exp %52 : vector<16x16xf32>
    %54 = arith.mulf %53, %53 : vector<16x16xf32>
    %55 = arith.addf %53, %54 : vector<16x16xf32>
    %56 = arith.mulf %54, %54 : vector<16x16xf32>
    %57 = arith.addf %55, %56 : vector<16x16xf32>
    %58 = arith.mulf %56, %56 : vector<16x16xf32>
    %59 = arith.addf %57, %58 : vector<16x16xf32>
    %60 = arith.mulf %58, %58 : vector<16x16xf32>
    %61 = arith.addf %59, %60 : vector<16x16xf32>
    %62 = arith.cmpi sgt, %3, %1 : i32
    %63 = arith.extui %62 : i1 to i32
    %64 = arith.sitofp %63 : i32 to f32
    %cst_18 = arith.constant 1.000000e+00 : f32
    %65 = arith.addf %cst_18, %64 : f32
    %66 = vector.broadcast %43 : vector<16x1xf32> to vector<16x16xf32>
    %67 = arith.mulf %61, %66 : vector<16x16xf32>
    %cst_19 = arith.constant dense<0.000000e+00> : vector<16xf32>
    %68 = vector.multi_reduction <add>, %67, %cst_19 [0] : vector<16x16xf32> to vector<16xf32>
    %69 = vector.shape_cast %68 : vector<16xf32> to vector<1x16xf32>
    %70 = arith.mulf %69, %49 : vector<1x16xf32>
    %71 = vector.broadcast %65 : f32 to vector<1x16xf32>
    %72 = arith.mulf %70, %71 : vector<1x16xf32>
    %c0_20 = arith.constant 0 : index
    %c0_21 = arith.constant 0 : index
    %73 = vector.load %arg8[%c0_20, %c0_21] : memref<1x16xf32, #tpu.memory_space<vmem>>, vector<1x16xf32>
    tpu.vector_store %arg8[%c0_20, %c0_21], %72 {strides = array<i32>} : memref<1x16xf32, #tpu.memory_space<vmem>>, vector<1x16xf32>,
    return
  }
  func.func @transform_0(%arg0: i32, %arg1: memref<1xi32, #tpu.memory_space<smem>>, %arg2: memref<1xi32, #tpu.memory_space<smem>>) -> i32 {
    %c0_i32 = arith.constant 0 : i32
    %c0_i32_0 = arith.constant 0 : i32
    return %c0_i32 : i32
  }
  func.func @transform_1(%arg0: i32, %arg1: memref<1xi32, #tpu.memory_space<smem>>, %arg2: memref<1xi32, #tpu.memory_space<smem>>) -> (i32, i32) {
    %0 = arith.index_cast %arg0 : i32 to index
    %1 = memref.load %arg1[%0] : memref<1xi32, #tpu.memory_space<smem>>
    %c0_i32 = arith.constant 0 : i32
    %c0_i32_0 = arith.constant 0 : i32
    return %1, %c0_i32 : i32, i32
  }
  func.func @transform_2(%arg0: i32, %arg1: memref<1xi32, #tpu.memory_space<smem>>, %arg2: memref<1xi32, #tpu.memory_space<smem>>) -> (i32, i32) {
    %0 = arith.index_cast %arg0 : i32 to index
    %1 = memref.load %arg2[%0] : memref<1xi32, #tpu.memory_space<smem>>
    %c0_i32 = arith.constant 0 : i32
    %c0_i32_0 = arith.constant 0 : i32
    return %1, %c0_i32 : i32, i32
  }
  func.func @transform_3(%arg0: i32, %arg1: memref<1xi32, #tpu.memory_space<smem>>, %arg2: memref<1xi32, #tpu.memory_space<smem>>) -> (i32, i32) {
    %0 = arith.index_cast %arg0 : i32 to index
    %1 = memref.load %arg1[%0] : memref<1xi32, #tpu.memory_space<smem>>
    %c0_i32 = arith.constant 0 : i32
    %c0_i32_0 = arith.constant 0 : i32
    return %1, %c0_i32 : i32, i32
  }
  func.func @transform_4(%arg0: i32, %arg1: memref<1xi32, #tpu.memory_space<smem>>, %arg2: memref<1xi32, #tpu.memory_space<smem>>) -> (i32, i32) {
    %0 = arith.index_cast %arg0 : i32 to index
    %1 = memref.load %arg2[%0] : memref<1xi32, #tpu.memory_space<smem>>
    %c0_i32 = arith.constant 0 : i32
    %c0_i32_0 = arith.constant 0 : i32
    return %c0_i32, %1 : i32, i32
  }
  func.func @transform_5(%arg0: i32, %arg1: memref<1xi32, #tpu.memory_space<smem>>, %arg2: memref<1xi32, #tpu.memory_space<smem>>) -> (i32, i32) {
    %c0_i32 = arith.constant 0 : i32
    %c0_i32_0 = arith.constant 0 : i32
    return %arg0, %c0_i32 : i32, i32
  }
}

</mosaic_0001>

<bundles_post_ra>
// kernel: tpu_custom_call.1
= control target key start
LH: loop header
LB: loop body
LE: loop exit
PB: predicated region body
PF: predicated region fallthrough
CT: control target
= control target key end

     0   :  { %14 = vsyncpa [#allocation7], 0  ;;  %s491_s0 = inlined_call_operand.<no memory space> [shape: s32[1], index: 0, kind: input, shape index: {}]   ;;  %s492_s1 = inlined_call_operand.<no memory space> [shape: s32[1], index: 1, kind: input, shape index: {}]   ;;  %s493_s2 = inlined_call_operand.vmem [shape: f32[5], index: 2, kind: input, shape index: {}]   ;;  %s494_s3 = inlined_call_operand.vmem [shape: bf16[16,128], index: 3, kind: input, shape index: {}]   ;;  %s495_s4 = inlined_call_operand.vmem [shape: bf16[16,128], index: 4, kind: input, shape index: {}]   ;;  %s496_s5 = inlined_call_operand.vmem [shape: f32[16,1], index: 5, kind: input, shape index: {}]   ;;  %s497_s6 = inlined_call_operand.vmem [shape: f32[1,16], index: 6, kind: input, shape index: {}]   ;;  %s498_s7 = inlined_call_operand.hbm [shape: f32[1,16], index: 7, kind: output, shape index: {}]  }
   0x1   :  { %15 = vsyncpa [#allocation6], 0  ;;  %s22_s26 = sshll.u32 %s493_s2, 4  ;;  %s23_s26 = int_to_ptr.vmem [resolvable:$true] %s22_s26 }
   0x2   :  { %s356_s27 = scalar_lea.vmem %s23_s26, 16  ;;  %p361_p1 = scmp.lt.s32.totalorder %s23_s26, %s23_s26 }
   0x3   :  { %p357_p0 = scmp.ne.s32.totalorder %s23_s26, %s356_s27  ;;  %p362_p2 = scmp.lt.s32.totalorder %s356_s27, %s356_s27 }
   0x5   :  { %p363_p3 = por %p362_p2, %p361_p1 }
   0x7   :  { %p364_p4 = pnand %p363_p3, %p357_p0 }
   0x9   :  { %367 = shalt.err (!%p364_p4)
}
   0xa   :  { %s392_s28 = smov [#allocation5]  }
   0xb   :  { %25 = dma.vmem_to_smem %s23_s26, 16, %s392_s28, [#allocation7]  }
   0xc   :  { %388 = dma.done.wait [#allocation7], 16  }
   0xd   :  { %389 = vsyncadd [#allocation7], 4294967280 }
   0xe   :  { %66 = sfence }
   0xf   :  { %s322_s8 = sshll.u32 %s492_s1, 1  ;;  %s320_s2 = sshll.u32 %s491_s0, 1  ;;  %v393_v0 = vmov 0.0   ;;  %vm394_vm0 = vmmov 0   ;;  %v395_v1 = vmov 0   ;;  %v204_v6 = vlaneseq }
  0x10   :  { %337 = vmatprep.subr.bf16.mxu0 %v393_v0  ;;  %p99_p5 = scmp.lt.s32.totalorder %s322_s8, 1  ;;  %339 = vmatprep.mubr.msk.bf16.mxu0 %vm394_vm0, %v393_v0  ;;  %p91_p6 = scmp.lt.s32.totalorder %s320_s2, 1  ;;  %v396_v46 = vmov -1.0   ;;  %vm269_vm7 = vcmask 130048   ;;  %vm282_vm10 = vcmask 122880  }
  0x11   :  { %349 = vset.pattern.permute.xlu0 %v395_v1  ;;  %p114_p7 = scmp.lt.s32.totalorder %s492_s1, 0  ;;  %s329_s30 = sshll.u32 %s491_s0, 4  ;;  %v205_v9 = vshrl.u32 %v204_v6, 7  ;;  %v212_v10 = vand.u32 127, %v204_v6 }
  0x12   :  { %s500_s8 = smov (!%p99_p5, %s322_s8), 1  ;;  %s502_s2 = smov (!%p91_p6, %s320_s2), 1  ;;  %v207_v11 = vstv %s329_s30 }
  0x13   :  { %s323_s11 = sshll.u32 %s500_s8, 2  ;;  %s321_s15 = sshll.u32 %s502_s2, 2  ;;  %v208_v15 = vadd.s32 %v207_v11, %v205_v9  ;;  %v206_v17 = vadd.s32 8, %v205_v9 }
  0x14   :  { %s102_s14 = scalar_lea.vmem %s495_s4, %s323_s11  ;;  %s94_s18 = scalar_lea.vmem %s494_s3, %s321_s15 }
  0x15   :  { %v350_v2 = vld [vmem:[%s102_s14] sm:$0xff]   ;;  %s325_s19 = sshll.u32 %s502_s2, 3  ;;  %s330_s10 = sshll.u32 %s492_s1, 4  ;;  %v209_v23 = vadd.s32 %v207_v11, %v206_v17  ;;  %vm221_vm3 = vcmp.lt.s32.totalorder %v208_v15, 16  ;;  %vm230_vm4 = vcmp.lt.s32.totalorder %v208_v15, 8 }
  0x16   :  { %s110_s22 = scalar_lea.vmem %s496_s5, %s325_s19  ;;  %338 = vmatpush3.bf16.xpose.msra.mxu0 %v350_v2  ;;  %v351_v5 = vld [vmem:[%s94_s18] sm:$0xff]   ;;  %v213_v12 = vstv %s330_s10  ;;  %s334_s2 = sld [smem:[#allocation5 + $0x4]]  ;;  %v331_v45 = vsel %vm221_vm3, 1.0, %v393_v0  ;;  %v232_v47 = vsel %vm230_vm4, 1.0, %v396_v46 }
  0x17   :  { %v178_v3 = vld [vmem:[%s110_s22] sm:$0xff]  ;;  %v179_v4 = vld [vmem:[%s110_s22 + $0x8] sm:$0xff]  ;;  %s115_s3 = scalar_select %p114_p7, %s492_s1, 0  ;;  %v473_v16 = vadd.s32 %v213_v12, %v212_v10  ;;  %vm222_vm5 = vcmp.lt.s32.totalorder %v209_v23, 16  ;;  %vm231_vm6 = vcmp.lt.s32.totalorder %v209_v23, 8  ;;  %v234_v54 = vmul.f32 %v331_v45, %v232_v47 }
  0x18   :  { %183 = vperm.xlu0 %349, %v178_v3   ;;  %v332_v52 = vsel %vm222_vm5, 1.0, %v393_v0  ;;  %v233_v53 = vsel %vm231_vm6, 1.0, %v396_v46  ;;  %p263_p8 = scmp.gt.s32.totalorder %s492_s1, %s491_s0  ;;  %s397_s0 = smov [#allocation8]  }
  0x19   :  { %s116_s5 = scalar_lea.vmem %s497_s6, %s115_s3  ;;  %vm217_vm1 = vcmp.eq.s32.totalorder %v208_v15, %v473_v16  ;;  %vm218_vm2 = vcmp.eq.s32.totalorder %v209_v23, %v473_v16  ;;  %v235_v58 = vmul.f32 %v332_v52, %v233_v53  ;;  %vm227_vm8 = vcmp.lt.s32.totalorder %v473_v16, 16  ;;  %s290_s1 = sshll.u32 %s397_s0, 4  ;;  %s291_s1 = int_to_ptr.vmem [resolvable:$true] %s290_s1 }
  0x1a   :  { %v328_v7 = vld [vmem:[%s116_s5] ss:$0 sm:$0xff]  ;;  %s264_s14 = scalar_select %p263_p8, 1, 0  ;;  %vm236_vm9 = vcmp.lt.s32.totalorder %v473_v16, 8 }
  0x1b   :  { %s368_s17 = scalar_lea.vmem %s291_s1, 16  ;;  %s372_s18 = scalar_lea.vmem %s291_s1, 32 }
  0x1c   :  { %188 = vperm.xlu0 %349, %v179_v4   ;;  %v240_v26 = vstv %s334_s2  ;;  %s265_s15 = scvt.s32.f32 %s264_s14  ;;  %p369_p9 = scmp.ne.s32.totalorder %s291_s1, %s368_s17 }
  0x1d   :  { %340 = vmatmul.mubr.bf16.vlgmr.msra.gmra.mxu0 %v351_v5  ;;  %p373_p10 = scmp.lt.s32.totalorder %s291_s1, %s291_s1  ;;  %p374_p11 = scmp.lt.s32.totalorder %s372_s18, %s368_s17 }
  0x1e   :  { %s266_s16 = sadd.f32 1.0, %s265_s15 }
  0x1f   :  { %p375_p12 = por %p374_p11, %p373_p10 }
  0x21   :  { %p376_p13 = pnand %p375_p12, %p369_p9 }
  0x93   :  { %v184_v8 = vpop.permute.xlu0 %183 }
  0x94   :  { %v197_v13 = vadd.f32 %v328_v7, %v184_v8  ;;  %v237_v8 = vsel %vm236_vm9, 1.0, %v396_v46 }
  0x97   :  { %v189_v19 = vpop.permute.xlu0 %188 }
  0x98   :  { %v198_v24 = vadd.f32 %v328_v7, %v189_v19  ;;  %v333_v7 = vsel %vm227_vm8, 1.0, %v393_v0 }
  0x99   :  { %v238_v10 = vmul.f32 %v333_v7, %v237_v8 }
  0xdd   :  { %v171_v14 = vpop.f32.mrf.mxu0 }
  0xde   :  { %v199_v18 = vmul.f32 2.0, %v171_v14 }
  0xdf   :  { %v341_v20 = vpop.f32.mrf.mxu0 }
  0xe0   :  { %v201_v21 = vsub.f32 %v197_v13, %v199_v18  ;;  %v280_v13 = vstv %s266_s16 }
  0xe1   :  { %v174_v22 = vpop.f32.mrf.mxu0 }
  0xe2   :  { %v215_v25 = vmax.f32 %v201_v21, 0.0  ;;  %v200_v27 = vmul.f32 2.0, %v174_v22 }
  0xe3   :  { %v342_v28 = vpop.f32.mrf.mxu0 }
  0xe4   :  { %v219_v29 = vsel %vm217_vm1, 0.0, %v215_v25  ;;  %v202_v30 = vsub.f32 %v198_v24, %v200_v27 }
  0xe5   :  { %v241_v31 = vmul.f32 %v240_v26, %v219_v29 }
  0xe6   :  { %v216_v32 = vmax.f32 %v202_v30, 0.0 }
  0xe7   :  { %v243_v33 = vmul.f32 1.442695, %v241_v31 }
  0xe8   :  { %v220_v34 = vsel %vm218_vm2, 0.0, %v216_v32 }
  0xe9   :  { %352 = vpow2.f32 %v243_v33  ;;  %v242_v35 = vmul.f32 %v240_v26, %v220_v34 }
  0xeb   :  { %v245_v36 = vmul.f32 1.442695, %v242_v35 }
  0xed   :  { %354 = vpow2.f32 %v245_v36 }
  0xf6   :  { %v353_v37 = vpop.eup %352 }
  0xf7   :  { %v247_v38 = vmul.f32 %v353_v37, %v353_v37 }
  0xf9   :  { %v249_v39 = vadd.f32 %v353_v37, %v247_v38  ;;  %v251_v40 = vmul.f32 %v247_v38, %v247_v38 }
  0xfa   :  { %v355_v41 = vpop.eup %354 }
  0xfb   :  { %v248_v42 = vmul.f32 %v355_v41, %v355_v41  ;;  %v253_v43 = vadd.f32 %v251_v40, %v249_v39  ;;  %v255_v44 = vmul.f32 %v251_v40, %v251_v40 }
  0xfd   :  { %v250_v48 = vadd.f32 %v355_v41, %v248_v42  ;;  %v252_v49 = vmul.f32 %v248_v42, %v248_v42  ;;  %v257_v50 = vadd.f32 %v255_v44, %v253_v43  ;;  %v259_v51 = vmul.f32 %v255_v44, %v255_v44 }
  0xff   :  { %v254_v55 = vadd.f32 %v252_v49, %v250_v48  ;;  %v256_v56 = vmul.f32 %v252_v49, %v252_v49  ;;  %v261_v57 = vadd.f32 %v259_v51, %v257_v50 }
 0x101   :  { %v258_v59 = vadd.f32 %v256_v56, %v254_v55  ;;  %v260_v60 = vmul.f32 %v256_v56, %v256_v56  ;;  %v267_v62 = vmul.f32 %v261_v57, %v234_v54 }
 0x103   :  { %v262_v61 = vadd.f32 %v260_v60, %v258_v59  ;;  %v270_v1 = vsel %vm269_vm7, %v267_v62, 0.0 }
 0x105   :  { %v268_v63 = vmul.f32 %v262_v61, %v235_v58 }
 0x107   :  { %v271_v2 = vsel %vm269_vm7, %v268_v63, 0.0 }
 0x108   :  { %v272_v3 = vadd.f32 %v271_v2, %v270_v1 }
 0x10a   :  { %v273_v4 = vrot.slane %v272_v3, 4 }
 0x10c   :  { %v274_v5 = vadd.f32 %v273_v4, %v272_v3 }
 0x10e   :  { %v275_v6 = vrot.slane %v274_v5, 2 }
 0x110   :  { %v276_v9 = vadd.f32 %v275_v6, %v274_v5 }
 0x112   :  { %v277_v11 = vrot.slane %v276_v9, 1 }
 0x114   :  { %v278_v12 = vadd.f32 %v277_v11, %v276_v9 }
 0x116   :  { %v279_v14 = vmul.f32 %v278_v12, %v238_v10 }
 0x118   :  { %v281_v15 = vmul.f32 %v280_v13, %v279_v14 }
 0x11a   :  { %283 = vst.msk [vmem:[#allocation8] sm:$0x1] %vm282_vm10, %v281_v15 }
 0x11b   :  { %379 = shalt.err (!%p376_p13)
}
 0x11c   :  { %293 = dma.vmem_to_hbm [thread:$0]  %s291_s1, 16, %s498_s7, [#allocation6]  }
 0x11d   :  { %390 = dma.done.wait [#allocation6], 16  }
 0x11e   :  { %391 = vsyncadd [#allocation6], 4294967280 }
 0x11f   :  { %297 = vsyncpa [#allocation6], 1 }
 0x120   :  { %298 = vsyncpa [#allocation7], 1 }

</bundles_post_ra>
